<compile_context>
chip_gen: v7x
topology: tpu7x:2x2x1
jax: 0.10.0
libtpu: 0.0.40
codegen_flags: <defaults>
</compile_context>

<pallas_src>
import jax
import jax.numpy as jnp
from jax.experimental import pallas as pl
from jax.experimental.pallas import tpu as pltpu


def topic_prior_kernel(u_ref, c_ref, inv_alpha_ref, theta_ref):
    # u_ref:         (B, Kp)  uniform(0,1) samples
    # c_ref:         (1, Kp)  alpha + lgamma(exp(alpha))   (padded lanes: -1e30)
    # inv_alpha_ref: (1, Kp)  exp(-alpha)                  (padded lanes: 1.0)
    log_u = jnp.log(u_ref[...])                                   # EUP
    log_g = (log_u + c_ref[...]) * inv_alpha_ref[...]             # VPU, (1,Kp) broadcast
    g = jnp.exp(log_g)                                            # EUP; padded lanes -> 0
    denom = jnp.sum(g, axis=-1, keepdims=True)                    # XLU row reduce, (B,1)
    theta_ref[...] = g / denom                                    # normalize (exact)


def topic_prior_forward(x, alpha_param, key):
    """Pallas implementation of TopicPrior(learnable=True).forward(x)."""
    B = x.shape[0]
    K = alpha_param.shape[1]
    Kp = pl.cdiv(K, 128) * 128  # lane-dense padded topic dimension

    # --- Row-invariant precompute on the tiny (1, K) parameter (plain JAX) ---
    alpha_f = alpha_param.astype(jnp.float32)                 # (1, K) = log(concentration)
    exp_alpha = jnp.exp(alpha_f)                              # concentration alpha_k
    c = alpha_f + jax.lax.lgamma(exp_alpha)                   # log(alpha_k) + lgamma(alpha_k)
    inv_alpha = jnp.exp(-alpha_f)                             # 1 / alpha_k

    # Pad K -> Kp so the kernel output is lane-dense; padded lanes produce
    # g = exp((log u - 1e30) * 1) == 0 and never affect the row sums.
    pad = Kp - K
    c_p = jnp.pad(c, ((0, 0), (0, pad)), constant_values=-1e30)
    inv_alpha_p = jnp.pad(inv_alpha, ((0, 0), (0, pad)), constant_values=1.0)

    # Uniform(0,1) draws (clipped away from 0/1), generated with jax.random so
    # the kernel needs no TPU-only PRNG primitives.
    u = jax.random.uniform(key, (B, Kp), jnp.float32,
                           minval=1e-6, maxval=1.0 - 1e-6)

    theta_p = pl.pallas_call(
        topic_prior_kernel,
        out_shape=jax.ShapeDtypeStruct((B, Kp), jnp.float32),
        in_specs=[
            pl.BlockSpec((B, Kp), lambda: (0, 0)),            # uniforms
            pl.BlockSpec((1, Kp), lambda: (0, 0)),            # c = alpha + lgamma(exp(alpha))
            pl.BlockSpec((1, Kp), lambda: (0, 0)),            # inv_alpha = exp(-alpha)
        ],
        out_specs=pl.BlockSpec((B, Kp), lambda: (0, 0)),
    )(u, c_p, inv_alpha_p)

    # Slice the lane padding back off.
    return theta_p[:, :K]


if __name__ == "__main__":
    key = jax.random.PRNGKey(0)
    k_x, k_alpha, k_sample = jax.random.split(key, 3)

    B, V, K = 8, 512, 64

    # Input document batch (only the batch size is used by the module).
    x = jax.random.normal(k_x, (B, V), dtype=jnp.float32)

    # Deterministic xavier_uniform init for self.alpha of shape (1, K):
    # bound = sqrt(6 / (fan_in + fan_out)) = sqrt(6 / (K + 1))
    bound = (6.0 / (K + 1)) ** 0.5
    alpha_param = jax.random.uniform(k_alpha, (1, K), jnp.float32,
                                     minval=-bound, maxval=bound)

    theta = topic_prior_forward(x, alpha_param, k_sample)
    theta = jax.block_until_ready(theta)

    assert theta.shape == (B, K)
    row_sums = jnp.sum(theta, axis=-1)
    assert bool(jnp.all(theta >= 0.0)), "theta has negative entries"
    assert bool(jnp.allclose(row_sums, 1.0, atol=1e-3)), "theta rows do not sum to 1"

    print("KERNEL_OK")
</pallas_src>

<mosaic_0001>
module attributes {stable_mosaic.version = 11 : i64} {
  func.func @topic_prior_kernel(%arg0: memref<8x128xf32, #tpu.memory_space<vmem>>, %arg1: memref<1x128xf32, #tpu.memory_space<vmem>>, %arg2: memref<1x128xf32, #tpu.memory_space<vmem>>, %arg3: memref<8x128xf32, #tpu.memory_space<vmem>>) attributes {dimension_semantics = [], scalar_prefetch = 0 : i64, scratch_operands = 0 : i64, tpu.core_type = #tpu.core_type<tc>} {
    %c0 = arith.constant 0 : index
    %c0_0 = arith.constant 0 : index
    %0 = vector.load %arg0[%c0, %c0_0] : memref<8x128xf32, #tpu.memory_space<vmem>>, vector<8x128xf32>
    %1 = math.log %0 : vector<8x128xf32>
    %c0_1 = arith.constant 0 : index
    %c0_2 = arith.constant 0 : index
    %2 = vector.load %arg1[%c0_1, %c0_2] : memref<1x128xf32, #tpu.memory_space<vmem>>, vector<1x128xf32>
    %3 = vector.broadcast %2 : vector<1x128xf32> to vector<8x128xf32>
    %4 = arith.addf %1, %3 : vector<8x128xf32>
    %c0_3 = arith.constant 0 : index
    %c0_4 = arith.constant 0 : index
    %5 = vector.load %arg2[%c0_3, %c0_4] : memref<1x128xf32, #tpu.memory_space<vmem>>, vector<1x128xf32>
    %6 = vector.broadcast %5 : vector<1x128xf32> to vector<8x128xf32>
    %7 = arith.mulf %4, %6 : vector<8x128xf32>
    %8 = math.exp %7 : vector<8x128xf32>
    %cst = arith.constant dense<0.000000e+00> : vector<8xf32>
    %9 = vector.multi_reduction <add>, %8, %cst [1] : vector<8x128xf32> to vector<8xf32>
    %10 = vector.shape_cast %9 : vector<8xf32> to vector<8x1xf32>
    %11 = vector.broadcast %10 : vector<8x1xf32> to vector<8x128xf32>
    %12 = arith.divf %8, %11 : vector<8x128xf32>
    %c0_5 = arith.constant 0 : index
    %c0_6 = arith.constant 0 : index
    %13 = vector.load %arg3[%c0_5, %c0_6] : memref<8x128xf32, #tpu.memory_space<vmem>>, vector<8x128xf32>
    tpu.vector_store %arg3[%c0_5, %c0_6], %12 {strides = array<i32>} : memref<8x128xf32, #tpu.memory_space<vmem>>, vector<8x128xf32>,
    return
  }
}

</mosaic_0001>

<bundles_post_ra>
// kernel: tpu_custom_call.1
= control target key start
LH: loop header
LB: loop body
LE: loop exit
PB: predicated region body
PF: predicated region fallthrough
CT: control target
= control target key end

     0   :  { %8 = vsyncpa [#allocation3], 0  ;;  %s178_s0 = inlined_call_operand.hbm [shape: f32[8,128], index: 0, kind: input, shape index: {}]   ;;  %s179_s1 = inlined_call_operand.vmem [shape: f32[1,128], index: 1, kind: input, shape index: {}]   ;;  %s180_s2 = inlined_call_operand.vmem [shape: f32[1,128], index: 2, kind: input, shape index: {}]   ;;  %s181_s3 = inlined_call_operand.hbm [shape: f32[8,128], index: 3, kind: output, shape index: {}]  }
   0x1   :  { %9 = vsyncpa [#allocation4], 0  ;;  %s126_s12 = smov [#allocation2]   ;;  %s78_s16 = scalar_lea.hbm %s178_s0, 128 }
   0x2   :  { %s16_s13 = sshll.u32 %s126_s12, 4  ;;  %p79_p0 = scmp.ne.s32.totalorder %s178_s0, %s78_s16  ;;  %s17_s13 = int_to_ptr.vmem [resolvable:$true] %s16_s13 }
   0x3   :  { %p82_p1 = scmp.lt.u32.totalorder %s78_s16, %s178_s0 }
   0x5   :  { %p84_p2 = pnand %p82_p1, %p79_p0 }
   0x7   :  { %87 = shalt.err (!%p84_p2)
}
   0x8   :  { %s88_s21 = scalar_lea.vmem %s17_s13, 128  ;;  %p93_p4 = scmp.lt.s32.totalorder %s17_s13, %s17_s13 }
   0x9   :  { %p89_p3 = scmp.ne.s32.totalorder %s17_s13, %s88_s21  ;;  %p94_p5 = scmp.lt.s32.totalorder %s88_s21, %s88_s21 }
   0xb   :  { %p95_p6 = por %p94_p5, %p93_p4 }
   0xd   :  { %p96_p7 = pnand %p95_p6, %p89_p3 }
   0xf   :  { %99 = shalt.err (!%p96_p7)
}
  0x10   :  { %19 = dma.hbm_to_vmem [thread:$0]  %s178_s0, 128, %s17_s13, [#allocation3]  }
  0x11   :  { %122 = dma.done.wait [#allocation3], 128  }
  0x12   :  { %123 = vsyncadd [#allocation3], 4294967168  ;;  %v27_v0 = vld [vmem:[#allocation2] sm:$0xff]  ;;  %s127_s0 = smov [#allocation5]  }
  0x13   :  { %72 = vlog2.f32 %v27_v0  ;;  %v68_v2 = vld [vmem:[%s179_s1] ss:$0 sm:$0xff]  ;;  %s59_s28 = sshll.u32 %s127_s0, 4  ;;  %s60_s28 = int_to_ptr.vmem [resolvable:$true] %s59_s28 }
  0x14   :  { %v69_v4 = vld [vmem:[%s180_s2] ss:$0 sm:$0xff]  ;;  %s100_s1 = scalar_lea.vmem %s60_s28, 128  ;;  %p105_p9 = scmp.lt.s32.totalorder %s60_s28, %s60_s28 }
  0x15   :  { %p101_p8 = scmp.ne.s32.totalorder %s60_s28, %s100_s1  ;;  %p106_p10 = scmp.lt.s32.totalorder %s100_s1, %s100_s1 }
  0x17   :  { %p107_p11 = por %p106_p10, %p105_p9 }
  0x19   :  { %p108_p12 = pnand %p107_p11, %p101_p8 }
  0x1d   :  { %v73_v1 = vpop.eup %72 }
  0x1e   :  { %v29_v3 = vmul.f32 0.6931472, %v73_v1 }
  0x20   :  { %v37_v5 = vadd.f32 %v68_v2, %v29_v3 }
  0x22   :  { %v45_v6 = vmul.f32 %v69_v4, %v37_v5 }
  0x24   :  { %v46_v7 = vmul.f32 1.442695, %v45_v6 }
  0x26   :  { %74 = vpow2.f32 %v46_v7 }
  0x30   :  { %v75_v8 = vpop.eup %74 }
  0x31   :  { %48 = vadd.xlane.f32.xlu0 %v75_v8 }
  0xbe   :  { %v49_v9 = vpop.xlane.xlu0 %48 }
  0xbf   :  { %76 = vrcp.f32 %v49_v9 }
  0xc9   :  { %v77_v10 = vpop.eup %76 }
  0xca   :  { %v51_v11 = vmul.f32 %v77_v10, %v75_v8 }
  0xcc   :  { %52 = vst [vmem:[#allocation5] sm:$0xff] %v51_v11 }
  0xcd   :  { %111 = shalt.err (!%p108_p12)
}
  0xce   :  { %s112_s30 = scalar_lea.hbm %s181_s3, 128 }
  0xcf   :  { %p113_p13 = scmp.ne.s32.totalorder %s181_s3, %s112_s30  ;;  %p116_p0 = scmp.lt.u32.totalorder %s112_s30, %s181_s3 }
  0xd1   :  { %p118_p1 = pnand %p116_p0, %p113_p13 }
  0xd3   :  { %121 = shalt.err (!%p118_p1)
}
  0xd4   :  { %62 = dma.vmem_to_hbm [thread:$0]  %s60_s28, 128, %s181_s3, [#allocation4]  }
  0xd5   :  { %124 = dma.done.wait [#allocation4], 128  }
  0xd6   :  { %125 = vsyncadd [#allocation4], 4294967168 }
  0xd7   :  { %66 = vsyncpa [#allocation3], 1 }
  0xd8   :  { %67 = vsyncpa [#allocation4], 1 }

</bundles_post_ra>
